<compile_context>
chip_gen: v6e
topology: v6e:2x2x1
jax: 0.10.0
libtpu: 0.0.40
codegen_flags: <defaults>
</compile_context>

<pallas_src>
import functools

import jax
import jax.numpy as jnp
from jax import lax
from jax.experimental import pallas as pl
from jax.experimental.pallas import tpu as pltpu

TM_MATMUL = 512            # max output-row tile for the fused matmul kernel
TM_BN = 1024               # max row tile for the normalize+ReLU kernel
VMEM_LIMIT = 48 * 1024 * 1024


def _round_up(x, m):
    return ((x + m - 1) // m) * m


def _row_tile(rows, cap):
    """Largest row tile <= rows that satisfies TPU sublane layout rules."""
    if rows >= cap:
        return cap
    if rows >= 16:
        return (rows // 16) * 16
    return rows


def _pad_last(a, target):
    pad = target - a.shape[-1]
    if pad == 0:
        return a
    return jnp.pad(a, [(0, 0)] * (a.ndim - 1) + [(0, pad)])


# ----------------------------- Pallas kernels -------------------------------

def _matmul_bias_act_kernel(x_ref, w_ref, b_ref, o_ref, *stat_refs,
                            act, alpha, m_total, tm):
    """(1,tm,K)bf16 @ (1,K,Cp)bf16 -> (1,tm,Cp)f32 with fused bias+activation.

    Optional BatchNorm statistics (per-channel sum / sum-of-squares) are
    accumulated into resident (1, Cp) output blocks across the whole grid.
    """
    ph = pl.program_id(0)
    i = pl.program_id(1)
    acc = jnp.dot(x_ref[0], w_ref[0], preferred_element_type=jnp.float32)
    acc = acc + b_ref[...]                          # f32 epilogue
    if act == "leaky_relu":
        acc = jnp.where(acc >= 0, acc, alpha * acc)
    elif act == "tanh":
        acc = jnp.tanh(acc)
    o_ref[0] = acc.astype(o_ref.dtype)

    if stat_refs:
        s_ref, q_ref = stat_refs
        # Mask rows of a possibly-partial last tile out of the statistics.
        row = i * tm + lax.broadcasted_iota(jnp.int32, acc.shape, 0)
        a = jnp.where(row < m_total, acc, 0.0)

        @pl.when(jnp.logical_and(ph == 0, i == 0))
        def _():
            s_ref[...] = jnp.zeros_like(s_ref)
            q_ref[...] = jnp.zeros_like(q_ref)

        s_ref[...] += jnp.sum(a, axis=0, keepdims=True)
        q_ref[...] += jnp.sum(a * a, axis=0, keepdims=True)


def _scale_shift_relu_kernel(x_ref, sc_ref, sh_ref, o_ref):
    o_ref[...] = jnp.maximum(x_ref[...] * sc_ref[...] + sh_ref[...], 0.0)


# ------------------------------ Pallas wrappers ------------------------------

def _matmul_bias_act(cols, w2, bias, *, act, alpha=0.2, with_stats=False):
    """cols: (P, M, K) bf16, w2: (P, K, Cp) bf16, bias: (1, Cp) f32."""
    p, m, k = cols.shape
    cp = w2.shape[-1]
    tm = _row_tile(m, TM_MATMUL)
    grid = (p, pl.cdiv(m, tm))

    out_shape = [jax.ShapeDtypeStruct((p, m, cp), jnp.float32)]
    out_specs = [pl.BlockSpec((1, tm, cp), lambda ph, i: (ph, i, 0))]
    if with_stats:
        out_shape += [jax.ShapeDtypeStruct((1, cp), jnp.float32)] * 2
        out_specs += [pl.BlockSpec((1, cp), lambda ph, i: (0, 0))] * 2
    # Stats accumulate across the whole grid -> axes must be "arbitrary".
    sem = ("arbitrary", "arbitrary") if with_stats else ("parallel", "parallel")

    kernel = functools.partial(_matmul_bias_act_kernel, act=act, alpha=alpha,
                               m_total=m, tm=tm)
    return pl.pallas_call(
        kernel,
        out_shape=tuple(out_shape),
        grid=grid,
        in_specs=[
            pl.BlockSpec((1, tm, k), lambda ph, i: (ph, i, 0)),
            pl.BlockSpec((1, k, cp), lambda ph, i: (ph, 0, 0)),
            pl.BlockSpec((1, cp), lambda ph, i: (0, 0)),
        ],
        out_specs=tuple(out_specs),
        compiler_params=pltpu.CompilerParams(
            dimension_semantics=sem, vmem_limit_bytes=VMEM_LIMIT),
    )(cols, w2, bias)


def _batchnorm_relu(y2d, ch_sum, ch_sumsq, count, gamma, beta, cout, eps=1e-5):
    """Tiled normalize + affine + ReLU from precomputed per-channel stats."""
    rows, cp = y2d.shape
    mean = ch_sum / count
    var = jnp.maximum(ch_sumsq / count - mean * mean, 0.0)  # biased (training BN)
    g = jnp.zeros((1, cp), jnp.float32).at[0, :cout].set(gamma)
    b = jnp.zeros((1, cp), jnp.float32).at[0, :cout].set(beta)
    scale = g * lax.rsqrt(var + eps)         # padded channels: scale = shift = 0
    shift = b - mean * scale
    tm = _row_tile(rows, TM_BN)
    return pl.pallas_call(
        _scale_shift_relu_kernel,
        out_shape=jax.ShapeDtypeStruct((rows, cp), jnp.float32),
        grid=(pl.cdiv(rows, tm),),
        in_specs=[
            pl.BlockSpec((tm, cp), lambda i: (i, 0)),
            pl.BlockSpec((1, cp), lambda i: (0, 0)),
            pl.BlockSpec((1, cp), lambda i: (0, 0)),
        ],
        out_specs=pl.BlockSpec((tm, cp), lambda i: (i, 0)),
        compiler_params=pltpu.CompilerParams(
            dimension_semantics=("parallel",), vmem_limit_bytes=VMEM_LIMIT),
    )(y2d, scale, shift)


# ------------------------------ im2col glue ---------------------------------
# TODO(synk): fuse the patch gather below into the Pallas kernel (phase-wise
# BlockSpec index_map over kernel taps) so `cols` is never materialized in HBM.

def _im2col_conv(x, k, s, p):
    # x: NHWC.  Patch column order is (i, j, c), c fastest.
    n, h, w, c = x.shape
    ho = (h + 2 * p - k) // s + 1
    wo = (w + 2 * p - k) // s + 1
    xp = jnp.pad(x, ((0, 0), (p, p), (p, p), (0, 0)))
    patches = [xp[:, i:i + s * ho:s, j:j + s * wo:s, :]
               for i in range(k) for j in range(k)]
    cols = jnp.concatenate(patches, axis=-1)            # (n, ho, wo, k*k*c)
    return cols.reshape(1, n * ho * wo, k * k * c), (n, ho, wo)


def _convt_phase_cols(x):
    """Sub-pixel decomposition of ConvTranspose2d(k=4, s=2, p=1) inputs.

    Phase (ry, rx) produces output pixels (2*i + ry, 2*j + rx); only a 2x2
    block of kernel taps contributes per phase.  Returns (4, n*h*w, 4*c).
    """
    n, h, w, c = x.shape
    phases = []
    for ry in range(2):
        for rx in range(2):
            xp = jnp.pad(x, ((0, 0), (1 - ry, ry), (1 - rx, rx), (0, 0)))
            patches = [xp[:, dy:dy + h, dx:dx + w, :]
                       for dy in range(2) for dx in range(2)]
            phases.append(
                jnp.concatenate(patches, axis=-1).reshape(n * h * w, 4 * c))
    return jnp.stack(phases, axis=0), (n, h, w)


def _convt_phase_weights(w):
    """w: (cin, cout, 4, 4) ConvTranspose2d weight -> (4, 4*cin, cout)."""
    cin, cout = w.shape[0], w.shape[1]
    mats = []
    for ry in range(2):
        for rx in range(2):
            taps = []
            for dy in range(2):
                for dx in range(2):
                    ky = (1 - ry) + 2 * (1 - dy)
                    kx = (1 - rx) + 2 * (1 - dx)
                    taps.append(w[:, :, ky, kx])          # (cin, cout)
            mats.append(jnp.stack(taps, axis=0).reshape(4 * cin, cout))
    return jnp.stack(mats, axis=0)


# ------------------------------ forward pass ---------------------------------

@functools.partial(jax.jit, static_argnames=("trans", "last", "cout"))
def _block_forward(x_nchw, w, bias, gamma, beta, *, trans, last, cout):
    x = jnp.transpose(x_nchw, (0, 2, 3, 1)).astype(jnp.float32)   # NHWC
    cp = _round_up(cout, 128)                                     # lane-dense Cout
    b_pad = jnp.zeros((1, cp), jnp.float32).at[0, :cout].set(bias)

    if not trans:
        cols, (n, ho, wo) = _im2col_conv(x, 4, 2, 1)
        in_ch = w.shape[1]
        # W2[(i,j,c), o] = w[o, c, i, j]
        w2 = jnp.transpose(w, (2, 3, 1, 0)).reshape(1, 16 * in_ch, cout)
        w2 = _pad_last(w2, cp).astype(jnp.bfloat16)
        (y,) = _matmul_bias_act(cols.astype(jnp.bfloat16), w2, b_pad,
                                act="leaky_relu", alpha=0.2)
        y = y[0].reshape(n, ho, wo, cp)[..., :cout]
    else:
        cols, (n, h, wd) = _convt_phase_cols(x)
        w2 = _pad_last(_convt_phase_weights(w), cp).astype(jnp.bfloat16)
        cols = cols.astype(jnp.bfloat16)
        if last:
            (y,) = _matmul_bias_act(cols, w2, b_pad, act="tanh")
        else:
            y, s, q = _matmul_bias_act(cols, w2, b_pad, act="none",
                                       with_stats=True)
            count = 4 * n * h * wd
            y = _batchnorm_relu(y.reshape(count, cp), s, q, count,
                                gamma, beta, cout)
            y = y.reshape(4, n * h * wd, cp)
        # Interleave the 4 sub-pixel phases back into the (2h, 2w) grid.
        y = y.reshape(2, 2, n, h, wd, cp)
        y = jnp.transpose(y, (2, 3, 0, 4, 1, 5)).reshape(n, 2 * h, 2 * wd, cp)
        y = y[..., :cout]
    return jnp.transpose(y, (0, 3, 1, 2))       # back to NCHW


class PallasBlock:
    """Pallas implementation of the PyTorch `_Block` forward pass (NCHW I/O)."""

    def __init__(self, in_ch, out, trans=False, last=False, key=None):
        self.in_ch, self.out, self.trans, self.last = in_ch, out, trans, last
        key = jax.random.PRNGKey(0) if key is None else key
        kwk, kbk = jax.random.split(key)
        k = 4
        bound = 1.0 / ((in_ch * k * k) ** 0.5)
        if not trans:
            # nn.Conv2d weight layout: (out, in, kh, kw)
            self.w = jax.random.uniform(kwk, (out, in_ch, k, k), jnp.float32, -bound, bound)
        else:
            # nn.ConvTranspose2d weight layout: (in, out, kh, kw)
            self.w = jax.random.uniform(kwk, (in_ch, out, k, k), jnp.float32, -bound, bound)
        self.b = jax.random.uniform(kbk, (out,), jnp.float32, -bound, bound)
        if trans and not last:
            self.gamma = jnp.ones((out,), jnp.float32)   # BatchNorm2d default init
            self.beta = jnp.zeros((out,), jnp.float32)
        else:
            self.gamma = None
            self.beta = None

    def __call__(self, x_nchw):
        return _block_forward(x_nchw, self.w, self.b, self.gamma, self.beta,
                              trans=self.trans, last=self.last, cout=self.out)


# ----------------------------- pure-JAX reference ----------------------------

def _reference(block, x_nchw):
    k, s, p = 4, 2, 1
    if not block.trans:
        y = lax.conv_general_dilated(
            x_nchw, block.w, window_strides=(s, s), padding=[(p, p), (p, p)],
            dimension_numbers=("NCHW", "OIHW", "NCHW"))
        y = y + block.b.reshape(1, -1, 1, 1)
        return jnp.where(y >= 0, y, 0.2 * y)
    w_eq = jnp.transpose(jnp.flip(block.w, axis=(2, 3)), (1, 0, 2, 3))
    y = lax.conv_general_dilated(
        x_nchw, w_eq, window_strides=(1, 1),
        padding=[(k - 1 - p, k - 1 - p)] * 2, lhs_dilation=(s, s),
        dimension_numbers=("NCHW", "OIHW", "NCHW"))
    y = y + block.b.reshape(1, -1, 1, 1)
    if block.last:
        return jnp.tanh(y)
    mean = jnp.mean(y, axis=(0, 2, 3), keepdims=True)
    var = jnp.var(y, axis=(0, 2, 3), keepdims=True)
    yn = (y - mean) * lax.rsqrt(var + 1e-5)
    yn = yn * block.gamma.reshape(1, -1, 1, 1) + block.beta.reshape(1, -1, 1, 1)
    return jnp.maximum(yn, 0.0)


if __name__ == "__main__":
    key = jax.random.PRNGKey(0)
    kx, k1, k2, k3 = jax.random.split(key, 4)
    x = jax.random.normal(kx, (2, 4, 16, 16), jnp.float32)  # NCHW, like PyTorch

    configs = [
        dict(trans=False, last=False),  # Conv2d(4,2,1) + LeakyReLU(0.2)
        dict(trans=True, last=False),   # ConvTranspose2d(4,2,1) + BatchNorm2d + ReLU
        dict(trans=True, last=True),    # ConvTranspose2d(4,2,1) + Tanh
    ]
    for cfg, kk in zip(configs, (k1, k2, k3)):
        blk = PallasBlock(4, 8, key=kk, **cfg)
        out = jax.block_until_ready(blk(x))
        ref = _reference(blk, x)
        assert out.shape == ref.shape, (out.shape, ref.shape)
        err = float(jnp.max(jnp.abs(out - ref)))
        assert jnp.allclose(out, ref, atol=3e-2, rtol=3e-2), (cfg, err)
    print("KERNEL_OK")
</pallas_src>

<mosaic_0001>
module attributes {stable_mosaic.version = 11 : i64} {
  func.func @_matmul_bias_act_kernel(%arg0: i32, %arg1: i32, %arg2: memref<1x128x64xbf16, #tpu.memory_space<vmem>>, %arg3: memref<1x64x128xbf16, #tpu.memory_space<vmem>>, %arg4: memref<1x128xf32, #tpu.memory_space<vmem>>, %arg5: memref<1x128x128xf32, #tpu.memory_space<vmem>>) attributes {dimension_semantics = [#tpu.dimension_semantics<parallel>, #tpu.dimension_semantics<parallel>], iteration_bounds = array<i64: 1, 1>, scalar_prefetch = 0 : i64, scratch_operands = 0 : i64, tpu.core_type = #tpu.core_type<tc>, window_params = [{transform_indices = @transform_0, window_bounds = array<i64: 1, 128, 64>}, {transform_indices = @transform_1, window_bounds = array<i64: 1, 64, 128>}, {pipeline_mode = #tpu.pipeline_mode<synchronous>, transform_indices = @transform_2, window_bounds = array<i64: 1, 128>}, {transform_indices = @transform_3, window_bounds = array<i64: 1, 128, 128>}]} {
    %c0 = arith.constant 0 : index
    %c0_0 = arith.constant 0 : index
    %c0_1 = arith.constant 0 : index
    %0 = vector.load %arg2[%c0, %c0_0, %c0_1] : memref<1x128x64xbf16, #tpu.memory_space<vmem>>, vector<1x128x64xbf16>
    %1 = vector.shape_cast %0 : vector<1x128x64xbf16> to vector<128x64xbf16>
    %c0_2 = arith.constant 0 : index
    %c0_3 = arith.constant 0 : index
    %c0_4 = arith.constant 0 : index
    %2 = vector.load %arg3[%c0_2, %c0_3, %c0_4] : memref<1x64x128xbf16, #tpu.memory_space<vmem>>, vector<1x64x128xbf16>
    %3 = vector.shape_cast %2 : vector<1x64x128xbf16> to vector<64x128xbf16>
    %cst = arith.constant dense<0.000000e+00> : vector<128x128xf32>
    %4 = tpu.matmul %1, %3, %cst {dimension_numbers = #tpu.dot_dimension_numbers<[1], [0], [0], [1], [0, 0, 1, 1], [], []>} : vector<128x64xbf16>, vector<64x128xbf16>, vector<128x128xf32> -> vector<128x128xf32>
    %c0_5 = arith.constant 0 : index
    %c0_6 = arith.constant 0 : index
    %5 = vector.load %arg4[%c0_5, %c0_6] : memref<1x128xf32, #tpu.memory_space<vmem>>, vector<1x128xf32>
    %6 = vector.broadcast %5 : vector<1x128xf32> to vector<128x128xf32>
    %7 = arith.addf %4, %6 : vector<128x128xf32>
    %cst_7 = arith.constant 0.000000e+00 : f32
    %8 = vector.broadcast %cst_7 : f32 to vector<128x128xf32>
    %9 = arith.cmpf oge, %7, %8 : vector<128x128xf32>
    %cst_8 = arith.constant 2.000000e-01 : f32
    %10 = vector.broadcast %cst_8 : f32 to vector<128x128xf32>
    %11 = arith.mulf %10, %7 : vector<128x128xf32>
    %12 = arith.select %9, %7, %11 : vector<128x128xi1>, vector<128x128xf32>
    %c0_9 = arith.constant 0 : index
    %c0_10 = arith.constant 0 : index
    %c0_11 = arith.constant 0 : index
    %13 = vector.load %arg5[%c0_9, %c0_10, %c0_11] : memref<1x128x128xf32, #tpu.memory_space<vmem>>, vector<1x128x128xf32>
    %14 = vector.shape_cast %13 : vector<1x128x128xf32> to vector<128x128xf32>
    %15 = vector.shape_cast %12 : vector<128x128xf32> to vector<1x128x128xf32>
    tpu.vector_store %arg5[%c0_9, %c0_10, %c0_11], %15 {strides = array<i32>} : memref<1x128x128xf32, #tpu.memory_space<vmem>>, vector<1x128x128xf32>,
    return
  }
  func.func @transform_0(%arg0: i32, %arg1: i32) -> (i32, i32, i32) {
    %c0_i32 = arith.constant 0 : i32
    %c0_i32_0 = arith.constant 0 : i32
    return %arg0, %arg1, %c0_i32 : i32, i32, i32
  }
  func.func @transform_1(%arg0: i32, %arg1: i32) -> (i32, i32, i32) {
    %c0_i32 = arith.constant 0 : i32
    %c0_i32_0 = arith.constant 0 : i32
    %c0_i32_1 = arith.constant 0 : i32
    return %arg0, %c0_i32, %c0_i32_0 : i32, i32, i32
  }
  func.func @transform_2(%arg0: i32, %arg1: i32) -> (i32, i32) {
    %c0_i32 = arith.constant 0 : i32
    %c0_i32_0 = arith.constant 0 : i32
    %c0_i32_1 = arith.constant 0 : i32
    return %c0_i32, %c0_i32_0 : i32, i32
  }
  func.func @transform_3(%arg0: i32, %arg1: i32) -> (i32, i32, i32) {
    %c0_i32 = arith.constant 0 : i32
    %c0_i32_0 = arith.constant 0 : i32
    return %arg0, %arg1, %c0_i32 : i32, i32, i32
  }
}

</mosaic_0001>

<bundles_post_ra>
// kernel: _block_forward.1
= control target key start
LH: loop header
LB: loop body
LE: loop exit
PB: predicated region body
PF: predicated region fallthrough
CT: control target
= control target key end

     0   :  { %vm110_vm0 = vcmask 523264   ;;  %s510_s1 = inlined_call_operand.vmem [shape: bf16[1,64,128], index: 1, kind: input, shape index: {}]   ;;  %s511_s0 = inlined_call_operand.vmem [shape: bf16[1,128,64], index: 0, kind: input, shape index: {}]   ;;  %s512_s2 = inlined_call_operand.vmem [shape: f32[1,128], index: 2, kind: input, shape index: {}]   ;;  %s513_s3 = inlined_call_operand.vmem [shape: f32[1,128,128], index: 3, kind: output, shape index: {}]  }
   0x1   :  { %v365_v0 = vld [vmem:[%s510_s1 + $0x18] sm:$0xff]   ;;  %v366_v1 = vld [vmem:[%s510_s1 + $0x10] sm:$0xff]   ;;  %v367_v2 = vld [vmem:[%s510_s1 + $0x8] sm:$0xff]  }
   0x2   :  { %333 = vmatprep.subr.bf16.mxu0 %v365_v0  ;;  %357 = vmatprep.subr.bf16.mxu1 %v365_v0  ;;  %v369_v3 = vld [vmem:[%s511_s0] sm:$0xff]   ;;  %v371_v6 = vld [vmem:[%s511_s0 + $0x8] sm:$0xff]   ;;  %v373_v8 = vld [vmem:[%s511_s0 + $0x10] sm:$0xff]  }
   0x3   :  { %334 = vmatpush3.bf16.msra.mxu0 %v365_v0  ;;  %361 = vmatpush3.bf16.msra.mxu1 %v365_v0  ;;  %v370_v4 = vld [vmem:[%s511_s0 + $0x20] sm:$0xff]   ;;  %v372_v7 = vld [vmem:[%s511_s0 + $0x28] sm:$0xff]   ;;  %v374_v9 = vld [vmem:[%s511_s0 + $0x30] sm:$0xff]  }
   0x4   :  { %335 = vmatprep.subr.bf16.mxu0 %v366_v1  ;;  %358 = vmatprep.subr.bf16.mxu1 %v366_v1  ;;  %v368_v5 = vld [vmem:[%s510_s1] sm:$0xff]   ;;  %v375_v10 = vld [vmem:[%s511_s0 + $0x18] sm:$0xff]  }
   0x5   :  { %341 = vmatprep.mubr.msk.bf16.mxu0 %vm110_vm0, %v369_v3  ;;  %349 = vmatprep.mubr.msk.bf16.mxu1 %vm110_vm0, %v370_v4  ;;  %v376_v11 = vld [vmem:[%s511_s0 + $0x38] sm:$0xff]   ;;  %v444_v12 = vld [vmem:[%s512_s2] ss:$0 sm:$0xff] }
   0x7   :  { %336 = vmatpush3.bf16.msra.mxu0 %v366_v1  ;;  %362 = vmatpush3.bf16.msra.mxu1 %v366_v1 }
   0x8   :  { %337 = vmatprep.subr.bf16.mxu0 %v367_v2  ;;  %359 = vmatprep.subr.bf16.mxu1 %v367_v2 }
   0xb   :  { %338 = vmatpush3.bf16.msra.mxu0 %v367_v2  ;;  %363 = vmatpush3.bf16.msra.mxu1 %v367_v2 }
   0xc   :  { %339 = vmatprep.subr.bf16.mxu0 %v368_v5  ;;  %360 = vmatprep.subr.bf16.mxu1 %v368_v5 }
   0xf   :  { %340 = vmatpush3.bf16.msra.mxu0 %v368_v5  ;;  %364 = vmatpush3.bf16.msra.mxu1 %v368_v5 }
  0x12   :  { %342 = vmatmul.mubr.msk.bf16.vlgmr.msra.gmra.mxu0 %vm110_vm0, %v371_v6  ;;  %350 = vmatmul.mubr.msk.bf16.vlgmr.msra.gmra.mxu1 %vm110_vm0, %v372_v7 }
  0x13   :  { %345 = vmatprep.mubr.msk.bf16.mxu0 %vm110_vm0, %v373_v8  ;;  %353 = vmatprep.mubr.msk.bf16.mxu1 %vm110_vm0, %v374_v9 }
  0x1a   :  { %346 = vmatmul.mubr.msk.bf16.gmra.mxu0 %vm110_vm0, %v375_v10  ;;  %354 = vmatmul.mubr.msk.bf16.gmra.mxu1 %vm110_vm0, %v376_v11 }
  0xd2   :  { %v343_v13 = vpop.f32.mrf.mxu0  ;;  %v351_v14 = vpop.f32.mrf.mxu1 }
  0xd3   :  { %v178_v15 = vadd.f32 %v343_v13, %v444_v12  ;;  %v210_v16 = vadd.f32 %v351_v14, %v444_v12 }
  0xd4   :  { %v169_v17 = vpop.f32.mrf.mxu0  ;;  %v201_v18 = vpop.f32.mrf.mxu1 }
  0xd5   :  { %vm234_vm1 = vcmp.ge.f32.partialorder %v178_v15, 0.0  ;;  %v250_v19 = vmul.f32 0.2, %v178_v15  ;;  %vm242_vm2 = vcmp.ge.f32.partialorder %v210_v16, 0.0  ;;  %v258_v20 = vmul.f32 0.2, %v210_v16 }
  0xd6   :  { %v170_v21 = vadd.f32 %v444_v12, %v169_v17  ;;  %v202_v22 = vadd.f32 %v444_v12, %v201_v18  ;;  %v344_v23 = vpop.f32.mrf.mxu0  ;;  %v352_v24 = vpop.f32.mrf.mxu1 }
  0xd7   :  { %v266_v25 = vsel %vm234_vm1, %v178_v15, %v250_v19  ;;  %v274_v26 = vsel %vm242_vm2, %v210_v16, %v258_v20  ;;  %v181_v27 = vadd.f32 %v344_v23, %v444_v12  ;;  %v213_v28 = vadd.f32 %v352_v24, %v444_v12 }
  0xd8   :  { %282 = vst [vmem:[%s513_s3 + $0x10] sm:$0xff] %v266_v25  ;;  %290 = vst [vmem:[%s513_s3 + $0x50] sm:$0xff] %v274_v26  ;;  %vm232_vm3 = vcmp.ge.f32.partialorder %v170_v21, 0.0  ;;  %v248_v29 = vmul.f32 0.2, %v170_v21  ;;  %vm240_vm4 = vcmp.ge.f32.partialorder %v202_v22, 0.0  ;;  %v172_v31 = vpop.f32.mrf.mxu0  ;;  %v204_v32 = vpop.f32.mrf.mxu1 }
  0xd9   :  { %v256_v30 = vmul.f32 0.2, %v202_v22  ;;  %vm235_vm5 = vcmp.ge.f32.partialorder %v181_v27, 0.0  ;;  %v251_v33 = vmul.f32 0.2, %v181_v27  ;;  %vm243_vm6 = vcmp.ge.f32.partialorder %v213_v28, 0.0 }
  0xda   :  { %v259_v34 = vmul.f32 0.2, %v213_v28  ;;  %v264_v35 = vsel %vm232_vm3, %v170_v21, %v248_v29  ;;  %v173_v37 = vadd.f32 %v444_v12, %v172_v31  ;;  %v205_v38 = vadd.f32 %v444_v12, %v204_v32  ;;  %v347_v39 = vpop.f32.mrf.mxu0  ;;  %v355_v40 = vpop.f32.mrf.mxu1 }
  0xdb   :  { %v272_v36 = vsel %vm240_vm4, %v202_v22, %v256_v30  ;;  %280 = vst [vmem:[%s513_s3] sm:$0xff] %v264_v35  ;;  %v267_v41 = vsel %vm235_vm5, %v181_v27, %v251_v33  ;;  %v194_v43 = vadd.f32 %v347_v39, %v444_v12  ;;  %v226_v44 = vadd.f32 %v355_v40, %v444_v12 }
  0xdc   :  { %288 = vst [vmem:[%s513_s3 + $0x40] sm:$0xff] %v272_v36  ;;  %v275_v42 = vsel %vm243_vm6, %v213_v28, %v259_v34  ;;  %283 = vst [vmem:[%s513_s3 + $0x18] sm:$0xff] %v267_v41  ;;  %vm233_vm7 = vcmp.ge.f32.partialorder %v173_v37, 0.0  ;;  %v249_v45 = vmul.f32 0.2, %v173_v37  ;;  %vm241_vm8 = vcmp.ge.f32.partialorder %v205_v38, 0.0  ;;  %v185_v47 = vpop.f32.mrf.mxu0  ;;  %v217_v48 = vpop.f32.mrf.mxu1 }
  0xdd   :  { %291 = vst [vmem:[%s513_s3 + $0x58] sm:$0xff] %v275_v42  ;;  %v257_v46 = vmul.f32 0.2, %v205_v38  ;;  %vm238_vm9 = vcmp.ge.f32.partialorder %v194_v43, 0.0  ;;  %v254_v49 = vmul.f32 0.2, %v194_v43  ;;  %v186_v53 = vadd.f32 %v444_v12, %v185_v47 }
  0xde   :  { %vm246_vm10 = vcmp.ge.f32.partialorder %v226_v44, 0.0  ;;  %v262_v50 = vmul.f32 0.2, %v226_v44  ;;  %v265_v51 = vsel %vm233_vm7, %v173_v37, %v249_v45  ;;  %v218_v54 = vadd.f32 %v444_v12, %v217_v48  ;;  %v348_v55 = vpop.f32.mrf.mxu0  ;;  %v356_v56 = vpop.f32.mrf.mxu1 }
  0xdf   :  { %v273_v52 = vsel %vm241_vm8, %v205_v38, %v257_v46  ;;  %281 = vst [vmem:[%s513_s3 + $0x8] sm:$0xff] %v265_v51  ;;  %v270_v57 = vsel %vm238_vm9, %v194_v43, %v254_v49  ;;  %v197_v59 = vadd.f32 %v348_v55, %v444_v12  ;;  %v229_v60 = vadd.f32 %v356_v56, %v444_v12 }
  0xe0   :  { %289 = vst [vmem:[%s513_s3 + $0x48] sm:$0xff] %v273_v52  ;;  %v278_v58 = vsel %vm246_vm10, %v226_v44, %v262_v50  ;;  %286 = vst [vmem:[%s513_s3 + $0x30] sm:$0xff] %v270_v57  ;;  %vm236_vm11 = vcmp.ge.f32.partialorder %v186_v53, 0.0  ;;  %v252_v61 = vmul.f32 0.2, %v186_v53  ;;  %vm244_vm12 = vcmp.ge.f32.partialorder %v218_v54, 0.0  ;;  %v188_v63 = vpop.f32.mrf.mxu0  ;;  %v220_v0 = vpop.f32.mrf.mxu1 }
  0xe1   :  { %294 = vst [vmem:[%s513_s3 + $0x70] sm:$0xff] %v278_v58  ;;  %v260_v62 = vmul.f32 0.2, %v218_v54  ;;  %vm239_vm13 = vcmp.ge.f32.partialorder %v197_v59, 0.0  ;;  %v255_v1 = vmul.f32 0.2, %v197_v59  ;;  %v189_v5 = vadd.f32 %v444_v12, %v188_v63 }
  0xe2   :  { %vm247_vm14 = vcmp.ge.f32.partialorder %v229_v60, 0.0  ;;  %v263_v2 = vmul.f32 0.2, %v229_v60  ;;  %v268_v3 = vsel %vm236_vm11, %v186_v53, %v252_v61  ;;  %v221_v6 = vadd.f32 %v444_v12, %v220_v0 }
  0xe3   :  { %v276_v4 = vsel %vm244_vm12, %v218_v54, %v260_v62  ;;  %284 = vst [vmem:[%s513_s3 + $0x20] sm:$0xff] %v268_v3  ;;  %v271_v7 = vsel %vm239_vm13, %v197_v59, %v255_v1  ;;  %vm237_vm15 = vcmp.ge.f32.partialorder %v189_v5, 0.0  ;;  %v253_v9 = vmul.f32 0.2, %v189_v5 }
  0xe4   :  { %292 = vst [vmem:[%s513_s3 + $0x60] sm:$0xff] %v276_v4  ;;  %v279_v8 = vsel %vm247_vm14, %v229_v60, %v263_v2  ;;  %287 = vst [vmem:[%s513_s3 + $0x38] sm:$0xff] %v271_v7  ;;  %vm245_vm0 = vcmp.ge.f32.partialorder %v221_v6, 0.0  ;;  %v261_v10 = vmul.f32 0.2, %v221_v6 }
  0xe5   :  { %295 = vst [vmem:[%s513_s3 + $0x78] sm:$0xff] %v279_v8  ;;  %v269_v11 = vsel %vm237_vm15, %v189_v5, %v253_v9 }
  0xe6   :  { %v277_v12 = vsel %vm245_vm0, %v221_v6, %v261_v10  ;;  %285 = vst [vmem:[%s513_s3 + $0x28] sm:$0xff] %v269_v11 }
  0xe7   :  { %293 = vst [vmem:[%s513_s3 + $0x68] sm:$0xff] %v277_v12 }

</bundles_post_ra>
